<compile_context>
chip_gen: v7x
topology: tpu7x:2x2x1
jax: 0.10.0
libtpu: 0.0.40
codegen_flags: <defaults>
</compile_context>

<pallas_src>
import functools

import numpy as np
import jax
import jax.numpy as jnp
from jax.experimental import pallas as pl
from jax.experimental.pallas import tpu as pltpu

WIN_SIZE = 11
WIN_SIGMA = 1.5
K1, K2 = 0.01, 0.03


def _gauss_window():
    # Matches pytorch_msssim._fspecial_gauss_1d(size=11, sigma=1.5)
    coords = np.arange(WIN_SIZE, dtype=np.float64) - WIN_SIZE // 2
    g = np.exp(-(coords ** 2) / (2.0 * WIN_SIGMA ** 2))
    return (g / g.sum()).astype(np.float32)


def _banded(full, valid):
    # B[i, j] = win[i - j] for j <= i < j + WIN_SIZE.  Right-multiplying a
    # (rows, full) matrix by B performs the 'valid' 1-D Gaussian
    # cross-correlation along the lane axis (window is symmetric, so this
    # equals the conv used by pytorch_msssim).
    win = _gauss_window()
    b = np.zeros((full, valid), np.float32)
    for j in range(valid):
        b[j:j + WIN_SIZE, j] = win
    return b


def _combined_loss_kernel(x_ref, y_ref, gw_ref, ght_ref, ssim_ref, l1_ref,
                          *, c1, c2, tile_nc, h, w, wv):
    # x_ref, y_ref: (T, H, W) VMEM blocks.  gw_ref: (W, Wv), ght_ref: (H, Hv).
    # ssim_ref, l1_ref: (1, 8, 128) lane-dense partial-sum output blocks.
    t = tile_nc
    xs = x_ref[...].astype(jnp.float32)          # (T, H, W)
    ys = y_ref[...].astype(jnp.float32)

    l1_sum = jnp.sum(jnp.abs(xs - ys))

    # Stack the five SSIM moment maps for all T channels along the leading
    # (slab) axis so each separable-filter pass is ONE large MXU matmul.
    maps = jnp.concatenate([xs, ys, xs * xs, ys * ys, xs * ys], axis=0)  # (5T,H,W)

    gw = gw_ref[...]                             # (W, Wv)
    ght = ght_ref[...]                           # (H, Hv)
    # MXU operands kept f32 for exact parity with the f32 reference.
    # TODO(synk): cast matmul operands to bf16 after validating E[x^2]-mu^2
    # cancellation against C2; ~3x on the MXU-dominated path.

    # Pass 1: valid Gaussian filter along W, M = 5*T*H.
    tw = jnp.dot(maps.reshape(5 * t * h, w), gw,
                 preferred_element_type=jnp.float32)          # (5T*H, Wv)
    # Swap the two minor dims so H sits on the lane axis for the second pass.
    twt = pltpu.einshape("nhw->nwh", tw.reshape(5 * t, h, wv))  # (5T, Wv, H)
    # Pass 2: valid Gaussian filter along H, M = 5*T*Wv.  (The spatial
    # transpose of the filtered maps is irrelevant: everything downstream is
    # elementwise + a full-tile sum.)
    f = jnp.dot(twt.reshape(5 * t * wv, h), ght,
                preferred_element_type=jnp.float32)           # (5T*Wv, Hv)

    g = t * wv
    mu1 = f[0 * g:1 * g]
    mu2 = f[1 * g:2 * g]
    exx = f[2 * g:3 * g]
    eyy = f[3 * g:4 * g]
    exy = f[4 * g:5 * g]

    mu1_sq = mu1 * mu1
    mu2_sq = mu2 * mu2
    mu12 = mu1 * mu2
    s1 = exx - mu1_sq
    s2 = eyy - mu2_sq
    s12 = exy - mu12

    num = (2.0 * mu12 + c1) * (2.0 * s12 + c2)
    den = (mu1_sq + mu2_sq + c1) * (s1 + s2 + c2)
    # Exact division preserves reference numerics.  pl.reciprocal(den,
    # approx=True) would move this onto the EUP but needs validation against
    # the PyTorch reference (C1/C2-scale interaction in flat regions).
    ssim_sum = jnp.sum(num / den)

    ssim_ref[...] = jnp.broadcast_to(ssim_sum, ssim_ref.shape).astype(jnp.float32)
    l1_ref[...] = jnp.broadcast_to(l1_sum, l1_ref.shape).astype(jnp.float32)


def _vmem_limit_bytes():
    # Generation-aware VMEM limit: ~75% of physical capacity with >=16 MiB of
    # headroom for compiler scratch (v7x: 64 MiB -> 48 MiB; v5e/v6e: 128 -> 96).
    cap = 128 * 1024 * 1024
    try:
        info = pltpu.get_tpu_info()
        cap_q = int(getattr(info, "vmem_capacity_bytes", 0) or 0)
        if cap_q > 0:
            cap = cap_q
    except Exception:
        pass
    return max(16 * 1024 * 1024, min(int(cap * 0.75), cap - 16 * 1024 * 1024))


def _pick_tile_nc(nc, h, w, itemsize, vmem_limit):
    hv = h - WIN_SIZE + 1
    wv = w - WIN_SIZE + 1
    # Resident filter matrices (counted double-buffered) + partial-sum blocks.
    fixed = 2 * 4 * (w * wv + h * hv) + 2 * 2 * 8 * 128 * 4
    # Per-channel: double-buffered x/y input blocks + batched f32 working set
    # (stacked maps, two filter passes, minor-dim-swapped copy, SSIM temps).
    per_ch = h * w * (4 * itemsize + 32 * 4)
    budget = int(vmem_limit * 0.6) - fixed
    cap = max(1, budget // per_ch)
    # grid >= 2: keeps both v7x TensorCores busy and preserves double-buffering.
    cap = min(int(cap), 16, max(1, nc // 2))
    for t in range(cap, 0, -1):
        if nc % t == 0:
            return t
    return 1


def combined_l1_ssim_loss(x, y, alpha=0.84, data_range=1.0):
    """x, y: NCHW arrays (float32 or bfloat16). Returns scalar float32 loss."""
    n, c, h, w = x.shape
    if h < WIN_SIZE or w < WIN_SIZE:
        raise ValueError(f"spatial dims must be >= win_size={WIN_SIZE}, got {(h, w)}")
    nc = n * c
    hv = h - WIN_SIZE + 1
    wv = w - WIN_SIZE + 1

    # (N*C, H, W): W on lanes, H on sublanes; only the channel axis is tiled.
    xf = jnp.reshape(x, (nc, h, w))
    yf = jnp.reshape(y, (nc, h, w))

    gw = jnp.asarray(_banded(w, wv))     # (W, Wv)  filter along W (lane axis)
    ght = jnp.asarray(_banded(h, hv))    # (H, Hv)  filter along H (after swap)
    # TODO(synk): band-tile the filter contraction (128/256-lane output blocks
    # over a (tile + WIN_SIZE - 1)-wide input band) for large W where the dense
    # banded matrices waste MXU FLOPs and O(W^2) VMEM.
    # TODO(synk): add H-axis tiling with a (WIN_SIZE-1)-row halo for very large
    # H*W where even tile_nc=1 exceeds the VMEM budget.

    vmem_limit = _vmem_limit_bytes()
    tile_nc = _pick_tile_nc(nc, h, w, jnp.dtype(x.dtype).itemsize, vmem_limit)
    grid = nc // tile_nc

    c1 = (K1 * float(data_range)) ** 2
    c2 = (K2 * float(data_range)) ** 2

    kernel = functools.partial(_combined_loss_kernel, c1=c1, c2=c2,
                               tile_nc=tile_nc, h=h, w=w, wv=wv)

    part_shape = jax.ShapeDtypeStruct((grid, 8, 128), jnp.float32)
    out_block = pl.BlockSpec((1, 8, 128), lambda i: (i, 0, 0))

    ssim_parts, l1_parts = pl.pallas_call(
        kernel,
        out_shape=(part_shape, part_shape),
        grid=(grid,),
        in_specs=[
            pl.BlockSpec((tile_nc, h, w), lambda i: (i, 0, 0)),   # x tile
            pl.BlockSpec((tile_nc, h, w), lambda i: (i, 0, 0)),   # y tile
            pl.BlockSpec((w, wv), lambda i: (0, 0)),              # Gw  (resident)
            pl.BlockSpec((h, hv), lambda i: (0, 0)),              # Gh^T (resident)
        ],
        out_specs=(out_block, out_block),
        compiler_params=pltpu.CompilerParams(
            dimension_semantics=("parallel",),      # no carried accumulator
            vmem_limit_bytes=vmem_limit,
        ),
    )(xf, yf, gw, ght)

    # Finalize in plain JAX: raw sums / global element counts (correct for any
    # tiling; single-pass f32 sums may differ from PyTorch by a few ULPs).
    ssim_mean = jnp.sum(ssim_parts[:, 0, 0]) / jnp.float32(nc * hv * wv)
    l1_mean = jnp.sum(l1_parts[:, 0, 0]) / jnp.float32(nc * h * w)
    return alpha * l1_mean + (1.0 - alpha) * (1.0 - ssim_mean)


if __name__ == "__main__":
    key = jax.random.PRNGKey(0)
    kx, ky = jax.random.split(key)
    # Small shapes consistent with the module; values in [0, 1] (data_range=1).
    x = jax.random.uniform(kx, (2, 4, 16, 16), dtype=jnp.float32)
    y = jax.random.uniform(ky, (2, 4, 16, 16), dtype=jnp.float32)

    loss = combined_l1_ssim_loss(x, y, alpha=0.84)
    jax.block_until_ready(loss)
    print("KERNEL_OK")
</pallas_src>

<mosaic_0001>
module attributes {stable_mosaic.version = 11 : i64} {
  func.func @_combined_loss_kernel(%arg0: i32, %arg1: memref<4x16x16xf32, #tpu.memory_space<vmem>>, %arg2: memref<4x16x16xf32, #tpu.memory_space<vmem>>, %arg3: memref<16x6xf32, #tpu.memory_space<vmem>>, %arg4: memref<16x6xf32, #tpu.memory_space<vmem>>, %arg5: memref<1x8x128xf32, #tpu.memory_space<vmem>>, %arg6: memref<1x8x128xf32, #tpu.memory_space<vmem>>) attributes {dimension_semantics = [#tpu.dimension_semantics<parallel>], iteration_bounds = array<i64: 2>, scalar_prefetch = 0 : i64, scratch_operands = 0 : i64, tpu.core_type = #tpu.core_type<tc>, window_params = [{transform_indices = @transform_0, window_bounds = array<i64: 4, 16, 16>}, {transform_indices = @transform_1, window_bounds = array<i64: 4, 16, 16>}, {pipeline_mode = #tpu.pipeline_mode<synchronous>, transform_indices = @transform_2, window_bounds = array<i64: 16, 6>}, {pipeline_mode = #tpu.pipeline_mode<synchronous>, transform_indices = @transform_3, window_bounds = array<i64: 16, 6>}, {transform_indices = @transform_4, window_bounds = array<i64: 1, 8, 128>}, {transform_indices = @transform_5, window_bounds = array<i64: 1, 8, 128>}]} {
    %c0 = arith.constant 0 : index
    %c0_0 = arith.constant 0 : index
    %c0_1 = arith.constant 0 : index
    %0 = vector.load %arg1[%c0, %c0_0, %c0_1] : memref<4x16x16xf32, #tpu.memory_space<vmem>>, vector<4x16x16xf32>
    %c0_2 = arith.constant 0 : index
    %c0_3 = arith.constant 0 : index
    %c0_4 = arith.constant 0 : index
    %1 = vector.load %arg2[%c0_2, %c0_3, %c0_4] : memref<4x16x16xf32, #tpu.memory_space<vmem>>, vector<4x16x16xf32>
    %2 = arith.subf %0, %1 : vector<4x16x16xf32>
    %3 = math.absf %2 : vector<4x16x16xf32>
    %4 = vector.shape_cast %3 : vector<4x16x16xf32> to vector<1x4x16x16xf32>
    %cst = arith.constant dense<0.000000e+00> : vector<1xf32>
    %5 = vector.multi_reduction <add>, %4, %cst [1, 2, 3] : vector<1x4x16x16xf32> to vector<1xf32>
    %6 = vector.shape_cast %5 : vector<1xf32> to vector<1x1x1x1xf32>
    %7 = vector.extract %6[0, 0, 0, 0] : f32 from vector<1x1x1x1xf32>
    %8 = arith.mulf %0, %0 : vector<4x16x16xf32>
    %9 = arith.mulf %1, %1 : vector<4x16x16xf32>
    %10 = arith.mulf %0, %1 : vector<4x16x16xf32>
    %11 = tpu.concatenate %0, %1, %8, %9, %10 in 0 : vector<4x16x16xf32>, vector<4x16x16xf32>, vector<4x16x16xf32>, vector<4x16x16xf32>, vector<4x16x16xf32> -> vector<20x16x16xf32>
    %c0_5 = arith.constant 0 : index
    %c0_6 = arith.constant 0 : index
    %12 = vector.load %arg3[%c0_5, %c0_6] : memref<16x6xf32, #tpu.memory_space<vmem>>, vector<16x6xf32>
    %c0_7 = arith.constant 0 : index
    %c0_8 = arith.constant 0 : index
    %13 = vector.load %arg4[%c0_7, %c0_8] : memref<16x6xf32, #tpu.memory_space<vmem>>, vector<16x6xf32>
    %14 = vector.shape_cast %11 : vector<20x16x16xf32> to vector<320x16xf32>
    %cst_9 = arith.constant dense<0.000000e+00> : vector<320x6xf32>
    %15 = tpu.matmul %14, %12, %cst_9 {dimension_numbers = #tpu.dot_dimension_numbers<[1], [0], [0], [1], [0, 0, 1, 1], [], []>} : vector<320x16xf32>, vector<16x6xf32>, vector<320x6xf32> -> vector<320x6xf32>
    %16 = vector.shape_cast %15 : vector<320x6xf32> to vector<20x16x6xf32>
    %17 = tpu.transpose %16, [0, 2, 1] : vector<20x16x6xf32> -> vector<20x6x16xf32>
    %18 = vector.shape_cast %17 : vector<20x6x16xf32> to vector<120x16xf32>
    %cst_10 = arith.constant dense<0.000000e+00> : vector<120x6xf32>
    %19 = tpu.matmul %18, %13, %cst_10 {dimension_numbers = #tpu.dot_dimension_numbers<[1], [0], [0], [1], [0, 0, 1, 1], [], []>} : vector<120x16xf32>, vector<16x6xf32>, vector<120x6xf32> -> vector<120x6xf32>
    %20 = vector.extract_strided_slice %19 {offsets = [0, 0], sizes = [24, 6], strides = [1, 1]} : vector<120x6xf32> to vector<24x6xf32>
    %21 = vector.extract_strided_slice %19 {offsets = [24, 0], sizes = [24, 6], strides = [1, 1]} : vector<120x6xf32> to vector<24x6xf32>
    %22 = vector.extract_strided_slice %19 {offsets = [48, 0], sizes = [24, 6], strides = [1, 1]} : vector<120x6xf32> to vector<24x6xf32>
    %23 = vector.extract_strided_slice %19 {offsets = [72, 0], sizes = [24, 6], strides = [1, 1]} : vector<120x6xf32> to vector<24x6xf32>
    %24 = vector.extract_strided_slice %19 {offsets = [96, 0], sizes = [24, 6], strides = [1, 1]} : vector<120x6xf32> to vector<24x6xf32>
    %25 = arith.mulf %20, %20 : vector<24x6xf32>
    %26 = arith.mulf %21, %21 : vector<24x6xf32>
    %27 = arith.mulf %20, %21 : vector<24x6xf32>
    %28 = arith.subf %22, %25 : vector<24x6xf32>
    %29 = arith.subf %23, %26 : vector<24x6xf32>
    %30 = arith.subf %24, %27 : vector<24x6xf32>
    %cst_11 = arith.constant 2.000000e+00 : f32
    %31 = vector.broadcast %cst_11 : f32 to vector<24x6xf32>
    %32 = arith.mulf %31, %27 : vector<24x6xf32>
    %cst_12 = arith.constant 9.99999974E-5 : f32
    %33 = vector.broadcast %cst_12 : f32 to vector<24x6xf32>
    %34 = arith.addf %32, %33 : vector<24x6xf32>
    %cst_13 = arith.constant 2.000000e+00 : f32
    %35 = vector.broadcast %cst_13 : f32 to vector<24x6xf32>
    %36 = arith.mulf %35, %30 : vector<24x6xf32>
    %cst_14 = arith.constant 8.99999984E-4 : f32
    %37 = vector.broadcast %cst_14 : f32 to vector<24x6xf32>
    %38 = arith.addf %36, %37 : vector<24x6xf32>
    %39 = arith.mulf %34, %38 : vector<24x6xf32>
    %40 = arith.addf %25, %26 : vector<24x6xf32>
    %cst_15 = arith.constant 9.99999974E-5 : f32
    %41 = vector.broadcast %cst_15 : f32 to vector<24x6xf32>
    %42 = arith.addf %40, %41 : vector<24x6xf32>
    %43 = arith.addf %28, %29 : vector<24x6xf32>
    %cst_16 = arith.constant 8.99999984E-4 : f32
    %44 = vector.broadcast %cst_16 : f32 to vector<24x6xf32>
    %45 = arith.addf %43, %44 : vector<24x6xf32>
    %46 = arith.mulf %42, %45 : vector<24x6xf32>
    %47 = arith.divf %39, %46 : vector<24x6xf32>
    %48 = vector.shape_cast %47 : vector<24x6xf32> to vector<1x24x6xf32>
    %cst_17 = arith.constant dense<0.000000e+00> : vector<1xf32>
    %49 = vector.multi_reduction <add>, %48, %cst_17 [1, 2] : vector<1x24x6xf32> to vector<1xf32>
    %50 = vector.shape_cast %49 : vector<1xf32> to vector<1x1x1xf32>
    %51 = vector.extract %50[0, 0, 0] : f32 from vector<1x1x1xf32>
    %52 = vector.broadcast %51 : f32 to vector<1x8x128xf32>
    %c0_18 = arith.constant 0 : index
    %c0_19 = arith.constant 0 : index
    %c0_20 = arith.constant 0 : index
    %53 = vector.load %arg5[%c0_18, %c0_19, %c0_20] : memref<1x8x128xf32, #tpu.memory_space<vmem>>, vector<1x8x128xf32>
    tpu.vector_store %arg5[%c0_18, %c0_19, %c0_20], %52 {strides = array<i32>} : memref<1x8x128xf32, #tpu.memory_space<vmem>>, vector<1x8x128xf32>,
    %54 = vector.broadcast %7 : f32 to vector<1x8x128xf32>
    %c0_21 = arith.constant 0 : index
    %c0_22 = arith.constant 0 : index
    %c0_23 = arith.constant 0 : index
    %55 = vector.load %arg6[%c0_21, %c0_22, %c0_23] : memref<1x8x128xf32, #tpu.memory_space<vmem>>, vector<1x8x128xf32>
    tpu.vector_store %arg6[%c0_21, %c0_22, %c0_23], %54 {strides = array<i32>} : memref<1x8x128xf32, #tpu.memory_space<vmem>>, vector<1x8x128xf32>,
    return
  }
  func.func @transform_0(%arg0: i32) -> (i32, i32, i32) {
    %c0_i32 = arith.constant 0 : i32
    %c0_i32_0 = arith.constant 0 : i32
    %c0_i32_1 = arith.constant 0 : i32
    return %arg0, %c0_i32, %c0_i32_0 : i32, i32, i32
  }
  func.func @transform_1(%arg0: i32) -> (i32, i32, i32) {
    %c0_i32 = arith.constant 0 : i32
    %c0_i32_0 = arith.constant 0 : i32
    %c0_i32_1 = arith.constant 0 : i32
    return %arg0, %c0_i32, %c0_i32_0 : i32, i32, i32
  }
  func.func @transform_2(%arg0: i32) -> (i32, i32) {
    %c0_i32 = arith.constant 0 : i32
    %c0_i32_0 = arith.constant 0 : i32
    %c0_i32_1 = arith.constant 0 : i32
    return %c0_i32, %c0_i32_0 : i32, i32
  }
  func.func @transform_3(%arg0: i32) -> (i32, i32) {
    %c0_i32 = arith.constant 0 : i32
    %c0_i32_0 = arith.constant 0 : i32
    %c0_i32_1 = arith.constant 0 : i32
    return %c0_i32, %c0_i32_0 : i32, i32
  }
  func.func @transform_4(%arg0: i32) -> (i32, i32, i32) {
    %c0_i32 = arith.constant 0 : i32
    %c0_i32_0 = arith.constant 0 : i32
    %c0_i32_1 = arith.constant 0 : i32
    return %arg0, %c0_i32, %c0_i32_0 : i32, i32, i32
  }
  func.func @transform_5(%arg0: i32) -> (i32, i32, i32) {
    %c0_i32 = arith.constant 0 : i32
    %c0_i32_0 = arith.constant 0 : i32
    %c0_i32_1 = arith.constant 0 : i32
    return %arg0, %c0_i32, %c0_i32_0 : i32, i32, i32
  }
}

</mosaic_0001>

<bundles_post_ra>
// kernel: tpu_custom_call.1
= control target key start
LH: loop header
LB: loop body
LE: loop exit
PB: predicated region body
PF: predicated region fallthrough
CT: control target
= control target key end

     0   :  { %s3723_s0 = inlined_call_operand.hbm [shape: f32[8,16,16], index: 0, kind: input, shape index: {}]   ;;  %s3724_s1 = inlined_call_operand.hbm [shape: f32[8,16,16], index: 1, kind: input, shape index: {}]   ;;  %s3725_s2 = inlined_call_operand.hbm [shape: f32[16,6], index: 2, kind: input, shape index: {}]   ;;  %s3726_s3 = inlined_call_operand.hbm [shape: f32[16,6], index: 3, kind: input, shape index: {}]   ;;  %s3727_s4 = inlined_call_operand.hbm [shape: f32[2,8,128], index: 4, kind: output, shape index: {0}]   ;;  %s3728_s5 = inlined_call_operand.hbm [shape: f32[2,8,128], index: 5, kind: output, shape index: {1}]  }
   0x1   :  { %3736 = sst [smem:[#allocation19_spill]] %s3723_s0 }
   0x2   :  { %3737 = sst [smem:[#allocation20_spill]] %s3725_s2 }
   0x3   :  { %11 = vsyncpa [#allocation3], 0 }
   0x4   :  { %13 = vsyncpa [#allocation3 + $0x1], 0 }
   0x5   :  { %14 = vsyncpa [#allocation6], 0 }
   0x6   :  { %16 = vsyncpa [#allocation6 + $0x1], 0 }
   0x7   :  { %17 = vsyncpa [#allocation9], 0 }
   0x8   :  { %18 = vsyncpa [#allocation4], 0 }
   0x9   :  { %20 = vsyncpa [#allocation4 + $0x1], 0 }
   0xa   :  { %21 = vsyncpa [#allocation12], 0 }
   0xb   :  { %23 = vsyncpa [#allocation12 + $0x1], 0  ;;  %s3080_s18 = smov 0   ;;  %s3082_s19 = smov 0  }
   0xc   :  { %s3084_s20 = smov 0   ;;  %s3086_s21 = smov 0  }
   0xd LB: > { %s3101_s22 = sadd.s32 4294967295, %s3036_s21   ;;  %s2451_s23 = sadd.s32 4294967294, %s3036_s21   ;;  %s3036_s21 = sphi %s3086_s21, %s3760_s21   ;;  %s3032_s20 = sphi %s3084_s20, %s3759_s20   ;;  %s3028_s19 = sphi %s3082_s19, %s3758_s19   ;;  %s3024_s18 = sphi %s3080_s18, %s3757_s18  }
   0xe   : > { %p49_p0 = scmp.ne.s32.totalorder %s3028_s19, %s3024_s18  ;;  %p3729_p1 = scmp.eq.s32.totalorder %s3101_s22, 0 }
   0xf   : > { %p147_p3 = scmp.eq.s32.totalorder %s2451_s23, 1  ;;  %p2452_p5 = scmp.ge.s32.totalorder %s3036_s21, 1 }
  0x10   : > { %p3110_p4 = por %p3729_p1, %p49_p0  ;;  %p180_p7 = scmp.lt.s32.totalorder %s3036_s21, 3 }
  0x11   : > { %p3115_p6 = por %p147_p3, %p49_p0  ;;  %s3038_s27 = smov [#allocation7]  }
  0x12   : > { %s3738_s24 = scalar_select %p3110_p4, 1, 0 }
  0x13   : > { %s3739_s25 = scalar_select %p3115_p6, 1, 0 }
  0x14   : > { %p3120_p8 = pnand %p2452_p5, %p180_p7  ;;  %s192_s28 = sshll.u32 %s3038_s27, 4  ;;  %s3124_s28 = int_to_ptr.vmem [resolvable:$true] %s192_s28 }
  0x15   : > { %s3039_s30 = smov [#allocation8]   ;;  %s3742_s2 = sld [smem:[#allocation20_spill]] }
  0x16   : > { %p2737_p9 = pneg %p3120_p8  ;;  %s205_s6 = sshll.u32 %s3039_s30, 4  ;;  %s3135_s6 = int_to_ptr.vmem [resolvable:$true] %s205_s6 }
  0x18   : > { %p3131_p11 = pnand %p2737_p9, %p3729_p1 }
  0x1a   : > { %p2812_p13 = pneg %p3131_p11 }
  0x1b   : > { %s2810_s9 = scalar_lea.hbm %s3742_s2, 256 }
  0x1c   : > { %p2811_p12 = scmp.ne.s32.totalorder %s3742_s2, %s2810_s9  ;;  %p2817_p5 = scmp.lt.u32.totalorder %s2810_s9, %s3742_s2 }
  0x1e   : > { %p2813_p0 = pnand %p2812_p13, %p2811_p12 }
  0x20   : > { %p2814_p3 = pneg %p2813_p0 }
  0x22   : > { %p2819_p7 = pnand %p2817_p5, %p2814_p3 }
  0x24   : > { %2822 = shalt.err (!%p2819_p7)
}
  0x25   : > { %s2823_s14 = scalar_lea.vmem %s3124_s28, 256  ;;  %p2831_p2 = scmp.lt.s32.totalorder %s3124_s28, %s3124_s28 }
  0x26   : > { %p2824_p9 = scmp.ne.s32.totalorder %s3124_s28, %s2823_s14  ;;  %p2832_p12 = scmp.lt.s32.totalorder %s2823_s14, %s2823_s14 }
  0x28   : > { %p2826_p10 = pnand %p2824_p9, %p2812_p13  ;;  %p2833_p0 = por %p2832_p12, %p2831_p2 }
  0x2a   : > { %p2827_p1 = pneg %p2826_p10 }
  0x2c   : > { %p2834_p6 = pnand %p2833_p0, %p2827_p1 }
  0x2e   : > { %2837 = shalt.err (!%p2834_p6)
}
  0x2f   : > { %s3730_s15 = smov 128   ;;  %s3732_s16 = smov 8  }
  0x30   : > { %2740 = dma.hbm_to_vmem [thread:$0]  (!%p3131_p11), %s3742_s2, 256, %s3124_s28, [#allocation6], %s3730_s15, %s3730_s15, %s3732_s16  }
  0x31   : > { %s2838_s7 = scalar_lea.hbm %s3726_s3, 256 }
  0x32   : > { %p2839_p1 = scmp.ne.s32.totalorder %s3726_s3, %s2838_s7  ;;  %p2845_p10 = scmp.lt.u32.totalorder %s2838_s7, %s3726_s3 }
  0x34   : > { %p2841_p2 = pnand %p2839_p1, %p2812_p13 }
  0x36   : > { %p2842_p6 = pneg %p2841_p2 }
  0x38   : > { %p2847_p3 = pnand %p2845_p10, %p2842_p6 }
  0x3a   : > { %2850 = shalt.err (!%p2847_p3)
}
  0x3b   : > { %s2851_s28 = scalar_lea.vmem %s3135_s6, 256  ;;  %p2859_p12 = scmp.lt.s32.totalorder %s3135_s6, %s3135_s6 }
  0x3c   : > { %p2852_p5 = scmp.ne.s32.totalorder %s3135_s6, %s2851_s28  ;;  %p2860_p0 = scmp.lt.s32.totalorder %s2851_s28, %s2851_s28 }
  0x3e   : > { %p2854_p7 = pnand %p2852_p5, %p2812_p13  ;;  %p2861_p1 = por %p2860_p0, %p2859_p12 }
  0x40   : > { %p2855_p9 = pneg %p2854_p7 }
  0x42   : > { %p2862_p2 = pnand %p2861_p1, %p2855_p9 }
  0x44   : > { %2865 = shalt.err (!%p2862_p2)
}
  0x45   : > { %2743 = dma.hbm_to_vmem [thread:$0]  (!%p3131_p11), %s3726_s3, 256, %s3135_s6, [#allocation9], %s3730_s15, %s3730_s15, %s3732_s16  }
  0x46   : > { %s3196_s29 = sadd.s32 1, %s3036_s21   ;;  %s36_s14 = sadd.s32 1, %s3032_s20 }
  0x47   : > { %s33_s17 = ssub.s32 %s3036_s21, %s3196_s29  ;;  %p43_p13 = scmp.ne.s32.totalorder %s3032_s20, %s3028_s19 }
  0x48   : > { %p34_p6 = scmp.eq.s32.totalorder %s33_s17, 0  ;;  %p44_p10 = scmp.eq.s32.totalorder %s3036_s21, 0 }
  0x49   : > { %p3743_p3 = scmp.eq.s32.totalorder %s3101_s22, 1  ;;  %p2760_p7 = scmp.lt.s32.totalorder %s3036_s21, 2 }
  0x4a   : > { %s3212_s27 = scalar_select %p34_p6, %s3032_s20, %s36_s14  }
  0x4b   : > { %p3206_p5 = por %p3743_p3, %p43_p13  ;;  %p45_p9 = por %p44_p10, %p43_p13 }
  0x4c   : > { %s219_s30 = sand.u32 1, %s3032_s20   ;;  %s2533_s6 = sshll.u32 %s3036_s21, 10 }
  0x4d   : > { %s3744_s23 = scalar_select %p3206_p5, 1, 0 }
  0x4e   : > { %s2456_s7 = sshll.u32 %s219_s30, 6  ;;  %s3745_s0 = sld [smem:[#allocation19_spill]] }
  0x4f   : > { %s223_s11 = scalar_lea.vmem [#allocation2], %s2456_s7  ;;  %p3223_p11 = pnand %p2760_p7, %p45_p9 }
  0x50   : > { %s231_s28 = sshll.u32 %s223_s11, 4  ;;  %s3230_s17 = scalar_lea.hbm %s3724_s1, %s2533_s6  ;;  %s3221_s28 = int_to_ptr.vmem [resolvable:$true] %s231_s28 }
  0x51   : > { %s245_s8 = scalar_lea.vmem [#allocation5], %s2456_s7  ;;  %s3234_s15 = scalar_lea.sflag [#allocation3], %s219_s30 }
  0x52   : > { %s3232_s9 = sshll.u32 %s245_s8, 4  ;;  %p2868_p0 = pneg %p3223_p11  ;;  %s3266_s9 = int_to_ptr.vmem [resolvable:$true] %s3232_s9 }
  0x54   : > { %s3219_s10 = scalar_lea.hbm %s3745_s0, %s2533_s6  ;;  %s2871_s13 = scalar_lea.hbm %s3745_s0, 2048 }
  0x55   : > { %s2866_s11 = scalar_lea.hbm %s3219_s10, 1024  ;;  %p2872_p13 = scmp.lt.u32.totalorder %s3219_s10, %s3745_s0 }
  0x56   : > { %p2867_p12 = scmp.ne.s32.totalorder %s3219_s10, %s2866_s11  ;;  %p2873_p6 = scmp.lt.u32.totalorder %s2871_s13, %s2866_s11 }
  0x57   : > { %p2875_p3 = scmp.lt.u32.totalorder %s2866_s11, %s3219_s10 }
  0x58   : > { %p2869_p1 = pnand %p2868_p0, %p2867_p12  ;;  %p2874_p10 = por %p2873_p6, %p2872_p13 }
  0x5a   : > { %p2870_p2 = pneg %p2869_p1  ;;  %p2876_p7 = por %p2875_p3, %p2874_p10 }
  0x5c   : > { %p2877_p9 = pnand %p2876_p7, %p2870_p2 }
  0x5e   : > { %2880 = shalt.err (!%p2877_p9)
}
  0x5f   : > { %s2881_s30 = scalar_lea.vmem %s3221_s28, 1024  ;;  %s3042_s2 = smov [#allocation2]  }
  0x60   : > { %p2882_p12 = scmp.ne.s32.totalorder %s3221_s28, %s2881_s30  ;;  %s2886_s16 = sshll.u32 %s3042_s2, 4  ;;  %s2887_s16 = int_to_ptr.vmem [resolvable:$false] %s2886_s16 }
  0x61   : > { %s2888_s7 = scalar_lea.vmem %s2887_s16, 2048  ;;  %p2889_p4 = scmp.lt.s32.totalorder %s3221_s28, %s2887_s16 }
  0x62   : > { %p2884_p1 = pnand %p2882_p12, %p2868_p0  ;;  %p2890_p13 = scmp.lt.s32.totalorder %s2888_s7, %s2881_s30 }
  0x64   : > { %p2885_p5 = pneg %p2884_p1  ;;  %p2891_p6 = por %p2890_p13, %p2889_p4 }
  0x66   : > { %p2892_p10 = pnand %p2891_p6, %p2885_p5 }
  0x68   : > { %2895 = shalt.err (!%p2892_p10)
}
  0x69   : > { %s3747_s8 = smov 8   ;;  %s3748_s11 = smov 128  }
  0x6a   : > { %2747 = dma.hbm_to_vmem [thread:$0]  (!%p3223_p11), %s3219_s10, 1024, %s3221_s28, %s3234_s15, %s3748_s11, %s3748_s11, %s3747_s8  }
  0x6b   : > { %s241_s13 = sand.u32 1, %s3036_s21   ;;  %s2896_s6 = scalar_lea.hbm %s3230_s17, 1024 }
  0x6c   : > { %s3269_s14 = scalar_lea.sflag [#allocation6], %s241_s13  ;;  %p2897_p4 = scmp.ne.s32.totalorder %s3230_s17, %s2896_s6 }
  0x6d   : > { %s2901_s16 = scalar_lea.hbm %s3724_s1, 2048  ;;  %p2902_p3 = scmp.lt.u32.totalorder %s3230_s17, %s3724_s1 }
  0x6e   : > { %p2899_p5 = pnand %p2897_p4, %p2868_p0  ;;  %p2903_p7 = scmp.lt.u32.totalorder %s2901_s16, %s2896_s6 }
  0x6f   : > { %p2905_p12 = scmp.lt.u32.totalorder %s2896_s6, %s3230_s17 }
  0x70   : > { %p2900_p2 = pneg %p2899_p5  ;;  %p2904_p9 = por %p2903_p7, %p2902_p3 }
  0x72   : > { %p2906_p1 = por %p2905_p12, %p2904_p9 }
  0x74   : > { %p2907_p13 = pnand %p2906_p1, %p2900_p2 }
  0x76   : > { %2910 = shalt.err (!%p2907_p13)
}
  0x77   : > { %s2911_s15 = scalar_lea.vmem %s3266_s9, 1024  ;;  %s3043_s10 = smov [#allocation5]  }
  0x78   : > { %p2912_p6 = scmp.ne.s32.totalorder %s3266_s9, %s2911_s15  ;;  %s2916_s28 = sshll.u32 %s3043_s10, 4  ;;  %s2917_s28 = int_to_ptr.vmem [resolvable:$false] %s2916_s28 }
  0x79   : > { %s2918_s0 = scalar_lea.vmem %s2917_s28, 2048  ;;  %p2919_p5 = scmp.lt.s32.totalorder %s3266_s9, %s2917_s28 }
  0x7a   : > { %p2914_p10 = pnand %p2912_p6, %p2868_p0  ;;  %p2920_p3 = scmp.lt.s32.totalorder %s2918_s0, %s2911_s15 }
  0x7c   : > { %p2915_p4 = pneg %p2914_p10  ;;  %p2921_p7 = por %p2920_p3, %p2919_p5 }
  0x7e   : > { %p2922_p9 = pnand %p2921_p7, %p2915_p4 }
  0x80   : > { %2925 = shalt.err (!%p2922_p9)
}
  0x81   : > { %2750 = dma.hbm_to_vmem [thread:$0]  (!%p3223_p11), %s3230_s17, 1024, %s3266_s9, %s3269_s14, %s3748_s11, %s3748_s11, %s3747_s8  }
  0x82   : > { %265 = sbr.rel (%p3120_p8) target bundleno = 1026 (0x402), region = 36  ;;  %s3301_s13 = sand.u32 (!%p3120_p8), 1, %s3028_s19  }
  0x83   : > { %s2465_s6 = sshll.u32 (!%p3120_p8), %s3301_s13, 6  ;;  %s268_s30 = scalar_lea.sflag (!%p3120_p8), [#allocation3], %s3301_s13 }
  0x84   : > { %s3305_s2 = scalar_lea.vmem (!%p3120_p8), [#allocation2], %s2465_s6  ;;  %p3749_p0 = scmp.ne.s32.totalorder (!%p3120_p8), %s3738_s24, 0 }
  0x89   : > { %2999 = dma.done.wait (%p3749_p0), %s268_s30, 1024  }
  0x8a   : > { %3001 = vsyncadd (%p3749_p0), %s268_s30, 4294966272  ;;  %s276_s12 = sand.u32 1, %s3101_s22   ;;  %s3312_s17 = scalar_lea.vmem [#allocation5], %s2465_s6 }
  0x8b   : > { %s277_s26 = scalar_lea.sflag [#allocation6], %s276_s12 }
  0x8c   : > { %3003 = dma.done.wait (%p3749_p0), %s277_s26, 1024  }
  0x8d   : > { %3005 = vsyncadd (%p3749_p0), %s277_s26, 4294966272  ;;  %p3750_p8 = scmp.eq.s32.totalorder %s3101_s22, 0 }
  0x8f   : > { %3007 = dma.done.wait (%p3750_p8), [#allocation6], 256   ;;  %p3751_p11 = pmov %p3750_p8 }
  0x90   : > { %p3752_p2 = pmov %p3750_p8 }
  0x91   : > { %3009 = vsyncadd (%p3751_p11), [#allocation6], 4294967040 }
  0x92   : > { %3011 = dma.done.wait (%p3752_p2), [#allocation9], 256   ;;  %p3753_p12 = pmov %p3752_p2 }
  0x93   : > { %vm359_vm0 = vcmask 130048   ;;  %v408_v0 = vld [vmem:[#allocation7] sm:$0xff]  ;;  %v409_v1 = vld [vmem:[#allocation7 + $0x8] sm:$0xff]  ;;  %v3335_v5 = vld [vmem:[%s3305_s2 + $0x10] sm:$0xff]  ;;  %vm3045_vm1 = vmmov 0   ;;  %vm2256_vm2 = vcmask 48128  }
  0x94   : > { %3013 = vsyncadd (%p3753_p12), [#allocation9], 4294967040  ;;  %v3327_v2 = vld [vmem:[%s3305_s2] sm:$0xff]  ;;  %v2708_v3 = vpack.c.bf16 %v409_v1, %v408_v0  ;;  %v3332_v4 = vld [vmem:[%s3305_s2 + $0x8] sm:$0xff]  ;;  %v386_v39 = vmul.f32 %v3335_v5, %v3335_v5  ;;  %s2469_s24 = sshll.u32 %s3301_s13, 3  ;;  %s2528_s11 = sshll.u32 %s3101_s22, 7 }
  0x95   : > { %2599 = vmatprep.mubr.msk.f32.mxu0 %vm359_vm0, %v3327_v2  ;;  %v3338_v6 = vld [vmem:[%s3305_s2 + $0x18] sm:$0xff]  ;;  %v3341_v7 = vld [vmem:[%s3305_s2 + $0x20] sm:$0xff]  ;;  %v3347_v9 = vld [vmem:[%s3312_s17 + $0x8] sm:$0xff]  ;;  %v384_v37 = vmul.f32 %v3327_v2, %v3327_v2  ;;  %v385_v38 = vmul.f32 %v3332_v4, %v3332_v4  ;;  %s324_s8 = scalar_lea.vmem [#allocation11], %s2469_s24  ;;  %s3652_s7 = scalar_lea.hbm %s3728_s5, %s2528_s11 }
  0x96   : > { %2709 = vmatprep.subr.bf16.mxu0 %v2708_v3  ;;  %v3344_v8 = vld [vmem:[%s3312_s17] sm:$0xff]  ;;  %2715 = vmatprep.subr.bf16.mxu1 %v2708_v3  ;;  %v344_v11 = vsub.f32 %v3332_v4, %v3347_v9  ;;  %v3354_v12 = vld [vmem:[%s3312_s17 + $0x10] sm:$0xff]  ;;  %v3357_v13 = vld [vmem:[%s3312_s17 + $0x18] sm:$0xff]  ;;  %v387_v40 = vmul.f32 %v3338_v6, %v3338_v6  ;;  %v388_v41 = vmul.f32 %v3341_v7, %v3341_v7  ;;  %s2307_s15 = sshll.u32 %s324_s8, 4  ;;  %s2281_s10 = scalar_lea.sflag [#allocation12], %s3301_s13  ;;  %s2308_s15 = int_to_ptr.vmem [resolvable:$true] %s2307_s15 }
  0x97   : > { %2711 = vmatpush3.bf16.msra.mxu0 %v2708_v3  ;;  %v343_v10 = vsub.f32 %v3327_v2, %v3344_v8  ;;  %v3360_v14 = vld [vmem:[%s3312_s17 + $0x20] sm:$0xff]  ;;  %v3363_v15 = vld [vmem:[%s3305_s2 + $0x28] sm:$0xff]  ;;  %v345_v16 = vsub.f32 %v3335_v5, %v3354_v12  ;;  %v346_v17 = vsub.f32 %v3338_v6, %v3357_v13  ;;  %2716 = vmatpush3.bf16.msra.mxu1 %v2708_v3  ;;  %v3386_v28 = vld [vmem:[%s3305_s2 + $0x30] sm:$0xff]  ;;  %s2926_s28 = scalar_lea.vmem %s2308_s15, 128  ;;  %p3754_p13 = scmp.ne.s32.totalorder %s3744_s23, 0 }
  0x98   : > { %v347_v18 = vsub.f32 %v3341_v7, %v3360_v14  ;;  %v3372_v19 = vld [vmem:[%s3312_s17 + $0x28] sm:$0xff]  ;;  %v352_v21 = vand.u32 2147483647, %v344_v11  ;;  %v3391_v30 = vld [vmem:[%s3312_s17 + $0x30] sm:$0xff]  ;;  %v404_v31 = vmul.f32 %v3360_v14, %v3341_v7  ;;  %v3402_v34 = vld [vmem:[%s3305_s2 + $0x38] sm:$0xff]  ;;  %v389_v42 = vmul.f32 %v3363_v15, %v3363_v15  ;;  %p2927_p1 = scmp.ne.s32.totalorder %s2308_s15, %s2926_s28  ;;  %s3048_s0 = smov [#allocation11]  }
  0x99   : > { %v351_v20 = vand.u32 2147483647, %v343_v10  ;;  %v348_v22 = vsub.f32 %v3363_v15, %v3372_v19  ;;  %v353_v23 = vand.u32 2147483647, %v345_v16  ;;  %v405_v32 = vmul.f32 %v3372_v19, %v3363_v15  ;;  %v3405_v35 = vld [vmem:[%s3312_s17 + $0x38] sm:$0xff]  ;;  %s2930_s6 = sshll.u32 %s3048_s0, 4  ;;  %s2931_s6 = int_to_ptr.vmem [resolvable:$false] %s2930_s6 }
  0x9a   : > { %2600 = vmatmul.mubr.msk.f32.vlgmr.msra.gmra.mrb[0].mxu0 %vm359_vm0, %v3332_v4  ;;  %v361_v25 = vsel %vm359_vm0, %v352_v21, 0.0  ;;  %v406_v33 = vmul.f32 %v3391_v30, %v3386_v28  ;;  %2653 = vmatprep.mubr.msk.f32.mxu1 %vm359_vm0, %v404_v31  ;;  %v407_v36 = vmul.f32 %v3405_v35, %v3402_v34  ;;  %v390_v43 = vmul.f32 %v3386_v28, %v3386_v28  ;;  %p2928_p6 = pnand %p2927_p1, %p3754_p13  ;;  %s2932_s30 = scalar_lea.vmem %s2931_s6, 256 }
  0x9b   : > { %2602 = vmatprep.mubr.msk.f32.mxu0 %vm359_vm0, %v3335_v5  ;;  %v360_v24 = vsel %vm359_vm0, %v351_v20, 0.0  ;;  %v363_v27 = vsel %vm359_vm0, %v353_v23, 0.0  ;;  %2654 = vmatmul.mubr.msk.f32.vlgmr.msra.gmra.mrb[0].mxu1 %vm359_vm0, %v405_v32  ;;  %v391_v44 = vmul.f32 %v3402_v34, %v3402_v34  ;;  %v392_v45 = vmul.f32 %v3344_v8, %v3344_v8  ;;  %p2933_p4 = scmp.lt.s32.totalorder %s2308_s15, %s2931_s6  ;;  %p2934_p5 = scmp.lt.s32.totalorder %s2932_s30, %s2926_s28 }
  0x9c   : > { %v362_v26 = vadd.f32 %v361_v25, %v360_v24  ;;  %2656 = vmatprep.mubr.msk.f32.mxu1 %vm359_vm0, %v406_v33  ;;  %v393_v46 = vmul.f32 %v3347_v9, %v3347_v9  ;;  %v394_v47 = vmul.f32 %v3354_v12, %v3354_v12  ;;  %v395_v48 = vmul.f32 %v3357_v13, %v3357_v13  ;;  %p2929_p10 = pneg %p2928_p6 }
  0x9d   : > { %v396_v49 = vmul.f32 %v3360_v14, %v3360_v14  ;;  %v397_v50 = vmul.f32 %v3372_v19, %v3372_v19  ;;  %v398_v51 = vmul.f32 %v3391_v30, %v3391_v30  ;;  %v399_v52 = vmul.f32 %v3405_v35, %v3405_v35  ;;  %p2935_p3 = por %p2934_p5, %p2933_p4 }
  0x9e   : > { %2603 = vmatmul.mubr.msk.f32.gmra.mrb[2].mxu0 %vm359_vm0, %v3338_v6  ;;  %v3388_v29 = vadd.f32 %v363_v27, %v362_v26  ;;  %v400_v53 = vmul.f32 %v3344_v8, %v3327_v2  ;;  %v401_v54 = vmul.f32 %v3347_v9, %v3332_v4  ;;  %v402_v55 = vmul.f32 %v3354_v12, %v3335_v5  ;;  %v410_v5 = vld [vmem:[#allocation8] sm:$0xff] }
  0x9f   : > { %2605 = vmatprep.mubr.msk.f32.mxu0 %vm359_vm0, %v3341_v7  ;;  %2657 = vmatmul.mubr.msk.f32.gmra.mrb[2].mxu1 %vm359_vm0, %v407_v36  ;;  %v403_v56 = vmul.f32 %v3357_v13, %v3338_v6  ;;  %v3044_v10 = vmov 0.0|0.0   ;;  %v3046_v16 = vmov 0.0   ;;  %v350_v6 = vsub.f32 %v3402_v34, %v3405_v35  ;;  %p2936_p7 = pnand %p2935_p3, %p2929_p10 }
  0xa0   : > { %2712 = vmatprep.subr.bf16.mxu1 %v3044_v10  ;;  %2663 = vmatprep.mubr.msk.f32.mxu1 %vm3045_vm1, %v3046_v16 }
  0xa2   : > { %2606 = vmatmul.mubr.msk.f32.gmra.mrb[4].mxu0 %vm359_vm0, %v3363_v15 }
  0xa3   : > { %2608 = vmatprep.mubr.msk.f32.mxu0 %vm359_vm0, %v3386_v28 }
  0xa6   : > { %2609 = vmatmul.mubr.msk.f32.gmra.mrb[6].mxu0 %vm359_vm0, %v3402_v34 }
  0xa7   : > { %2611 = vmatprep.mubr.msk.f32.mxu0 %vm359_vm0, %v3344_v8  ;;  %v411_v8 = vld [vmem:[#allocation8 + $0x8] sm:$0xff] }
  0xaa   : > { %2612 = vmatmul.mubr.msk.f32.gmra.mrb[8].mxu0 %vm359_vm0, %v3347_v9  ;;  %v2713_v9 = vpack.c.bf16 %v411_v8, %v410_v5 }
  0xab   : > { %2614 = vmatprep.mubr.msk.f32.mxu0 %vm359_vm0, %v3354_v12 }
  0xac   : > { %2714 = vmatpush3.bf16.msra.mxu1 %v2713_v9 }
  0xae   : > { %2615 = vmatmul.mubr.msk.f32.gmra.mrb[10].mxu0 %vm359_vm0, %v3357_v13 }
  0xaf   : > { %2617 = vmatprep.mubr.msk.f32.mxu0 %vm359_vm0, %v3360_v14  ;;  %v358_v14 = vand.u32 2147483647, %v350_v6 }
  0xb2   : > { %2618 = vmatmul.mubr.msk.f32.gmra.mrb[12].mxu0 %vm359_vm0, %v3372_v19  ;;  %v373_v19 = vsel %vm359_vm0, %v358_v14, 0.0 }
  0xb3   : > { %2620 = vmatprep.mubr.msk.f32.mxu0 %vm359_vm0, %v3391_v30 }
  0xb6   : > { %2621 = vmatmul.mubr.msk.f32.gmra.mrb[14].mxu0 %vm359_vm0, %v3405_v35 }
  0xb7   : > { %2623 = vmatprep.mubr.msk.f32.mxu0 %vm359_vm0, %v384_v37 }
  0xba   : > { %2624 = vmatmul.mubr.msk.f32.gmra.mrb[16].mxu0 %vm359_vm0, %v385_v38 }
  0xbb   : > { %2626 = vmatprep.mubr.msk.f32.mxu0 %vm359_vm0, %v386_v39 }
  0xbe   : > { %2627 = vmatmul.mubr.msk.f32.gmra.mrb[18].mxu0 %vm359_vm0, %v387_v40 }
  0xbf   : > { %2629 = vmatprep.mubr.msk.f32.mxu0 %vm359_vm0, %v388_v41 }
  0xc2   : > { %2630 = vmatmul.mubr.msk.f32.gmra.mrb[20].mxu0 %vm359_vm0, %v389_v42 }
  0xc3   : > { %2632 = vmatprep.mubr.msk.f32.mxu0 %vm359_vm0, %v390_v43 }
  0xc6   : > { %2633 = vmatmul.mubr.msk.f32.gmra.mrb[22].mxu0 %vm359_vm0, %v391_v44 }
  0xc7   : > { %2635 = vmatprep.mubr.msk.f32.mxu0 %vm359_vm0, %v392_v45 }
  0xca   : > { %2636 = vmatmul.mubr.msk.f32.gmra.mrb[24].mxu0 %vm359_vm0, %v393_v46 }
  0xcb   : > { %2638 = vmatprep.mubr.msk.f32.mxu0 %vm359_vm0, %v394_v47 }
  0xce   : > { %2639 = vmatmul.mubr.msk.f32.gmra.mrb[26].mxu0 %vm359_vm0, %v395_v48 }
  0xcf   : > { %2641 = vmatprep.mubr.msk.f32.mxu0 %vm359_vm0, %v396_v49 }
  0xd2   : > { %2642 = vmatmul.mubr.msk.f32.gmra.mrb[28].mxu0 %vm359_vm0, %v397_v50 }
  0xd3   : > { %2644 = vmatprep.mubr.msk.f32.mxu0 %vm359_vm0, %v398_v51 }
  0xd6   : > { %2645 = vmatmul.mubr.msk.f32.gmra.mrb[30].mxu0 %vm359_vm0, %v399_v52  ;;  %v3047_v52 = vmov 1983009808  }
  0xd7   : > { %2647 = vmatprep.mubr.msk.f32.mxu0 %vm359_vm0, %v400_v53  ;;  %v1459_v53 = vunpack.c.l.s4 %v3047_v52 }
  0xda   : > { %2648 = vmatmul.mubr.msk.f32.gmra.mrb[32].mxu0 %vm359_vm0, %v401_v54  ;;  %v1461_v54 = vlaneseq }
  0xdb   : > { %2650 = vmatprep.mubr.msk.f32.mxu0 %vm359_vm0, %v402_v55  ;;  %v1460_v55 = vunpack.c.0.s8 %v1459_v53 }
  0xde   : > { %2651 = vmatmul.mubr.msk.f32.gmra.mrb[34].mxu0 %vm359_vm0, %v403_v56  ;;  %v1462_v56 = vshrl.u32 %v1461_v54, 7 }
 0x16d   : > { %v2601_v57 = vpop.f32.mrb[0].mxu0 }
 0x16e   : > { %v598_v58 = vpop.f32.mrb[1].mxu0  ;;  %v3495_v61 = vpop.f32.mrb[0].mxu1 }
 0x16f   : > { %797 = vxpose.xlu0.b32.start [1/2] (short) (narrow) %v598_v58, 8  ;;  %v3497_v63 = vpop.f32.mrb[1].mxu1 }
 0x171   : > { %v2604_v59 = vpop.f32.mrb[2].mxu0 }
 0x172   : > { %v608_v60 = vpop.f32.mrb[3].mxu0  ;;  %v3499_v1 = vpop.f32.mrb[2].mxu1 }
 0x173   : > { %798 = vxpose.xlu0.b32.end [2/2] (short) (narrow) %v2601_v57, 8  ;;  %829 = vxpose.xlu1.b32.start [1/2] (short) (narrow) %v608_v60, 8  ;;  %v3501_v3 = vpop.f32.mrb[3].mxu1  ;;  %v3509_v57 = vsub.s32 %v1460_v55, %v1462_v56 }
 0x175   : > { %v2607_v62 = vpop.f32.mrb[4].mxu0 }
 0x176   : > { %v618_v0 = vpop.f32.mrb[5].mxu0 }
 0x177   : > { %830 = vxpose.xlu1.b32.end [2/2] (short) (narrow) %v2604_v59, 8  ;;  %861 = vxpose.xlu0.b32.start [1/2] (short) (narrow) %v618_v0, 8 }
 0x179   : > { %v2610_v2 = vpop.f32.mrb[6].mxu0 }
 0x17a   : > { %v628_v4 = vpop.f32.mrb[7].mxu0 }
 0x17b   : > { %862 = vxpose.xlu0.b32.end [2/2] (short) (narrow) %v2607_v62, 8  ;;  %893 = vxpose.xlu1.b32.start [1/2] (short) (narrow) %v628_v4, 8 }
 0x17d   : > { %v2613_v11 = vpop.f32.mrb[8].mxu0 }
 0x17e   : > { %v638_v12 = vpop.f32.mrb[9].mxu0 }
 0x17f   : > { %894 = vxpose.xlu1.b32.end [2/2] (short) (narrow) %v2610_v2, 8  ;;  %925 = vxpose.xlu0.b32.start [1/2] (short) (narrow) %v638_v12, 8 }
 0x181   : > { %v2616_v20 = vpop.f32.mrb[10].mxu0 }
 0x182   : > { %v648_v21 = vpop.f32.mrb[11].mxu0 }
 0x183   : > { %926 = vxpose.xlu0.b32.end [2/2] (short) (narrow) %v2613_v11, 8  ;;  %957 = vxpose.xlu1.b32.start [1/2] (short) (narrow) %v648_v21, 8 }
 0x185   : > { %v2619_v23 = vpop.f32.mrb[12].mxu0 }
 0x186   : > { %v658_v24 = vpop.f32.mrb[13].mxu0 }
 0x187   : > { %958 = vxpose.xlu1.b32.end [2/2] (short) (narrow) %v2616_v20, 8  ;;  %989 = vxpose.xlu0.b32.start [1/2] (short) (narrow) %v658_v24, 8 }
 0x189   : > { %v2622_v25 = vpop.f32.mrb[14].mxu0 }
 0x18a   : > { %v668_v26 = vpop.f32.mrb[15].mxu0 }
 0x18b   : > { %990 = vxpose.xlu0.b32.end [2/2] (short) (narrow) %v2619_v23, 8  ;;  %1021 = vxpose.xlu1.b32.start [1/2] (short) (narrow) %v668_v26, 8 }
 0x18d   : > { %v2625_v27 = vpop.f32.mrb[16].mxu0 }
 0x18e   : > { %v678_v31 = vpop.f32.mrb[17].mxu0 }
 0x18f   : > { %1022 = vxpose.xlu1.b32.end [2/2] (short) (narrow) %v2622_v25, 8  ;;  %1053 = vxpose.xlu0.b32.start [1/2] (short) (narrow) %v678_v31, 8 }
 0x191   : > { %v2628_v32 = vpop.f32.mrb[18].mxu0 }
 0x192   : > { %v688_v33 = vpop.f32.mrb[19].mxu0 }
 0x193   : > { %1054 = vxpose.xlu0.b32.end [2/2] (short) (narrow) %v2625_v27, 8  ;;  %1085 = vxpose.xlu1.b32.start [1/2] (short) (narrow) %v688_v33, 8 }
 0x195   : > { %v2631_v36 = vpop.f32.mrb[20].mxu0 }
 0x196   : > { %v698_v37 = vpop.f32.mrb[21].mxu0 }
 0x197   : > { %1086 = vxpose.xlu1.b32.end [2/2] (short) (narrow) %v2628_v32, 8  ;;  %1117 = vxpose.xlu0.b32.start [1/2] (short) (narrow) %v698_v37, 8 }
 0x199   : > { %v2634_v38 = vpop.f32.mrb[22].mxu0 }
 0x19a   : > { %v708_v39 = vpop.f32.mrb[23].mxu0 }
 0x19b   : > { %1118 = vxpose.xlu0.b32.end [2/2] (short) (narrow) %v2631_v36, 8  ;;  %1149 = vxpose.xlu1.b32.start [1/2] (short) (narrow) %v708_v39, 8 }
 0x19d   : > { %v2637_v40 = vpop.f32.mrb[24].mxu0 }
 0x19e   : > { %v718_v41 = vpop.f32.mrb[25].mxu0 }
 0x19f   : > { %1150 = vxpose.xlu1.b32.end [2/2] (short) (narrow) %v2634_v38, 8  ;;  %1181 = vxpose.xlu0.b32.start [1/2] (short) (narrow) %v718_v41, 8 }
 0x1a1   : > { %v2640_v42 = vpop.f32.mrb[26].mxu0 }
 0x1a2   : > { %v728_v43 = vpop.f32.mrb[27].mxu0 }
 0x1a3   : > { %1182 = vxpose.xlu0.b32.end [2/2] (short) (narrow) %v2637_v40, 8  ;;  %1213 = vxpose.xlu1.b32.start [1/2] (short) (narrow) %v728_v43, 8 }
 0x1a5   : > { %v2643_v44 = vpop.f32.mrb[28].mxu0 }
 0x1a6   : > { %v738_v45 = vpop.f32.mrb[29].mxu0 }
 0x1a7   : > { %1214 = vxpose.xlu1.b32.end [2/2] (short) (narrow) %v2640_v42, 8  ;;  %1245 = vxpose.xlu0.b32.start [1/2] (short) (narrow) %v738_v45, 8 }
 0x1a9   : > { %v2646_v46 = vpop.f32.mrb[30].mxu0 }
 0x1aa   : > { %v748_v47 = vpop.f32.mrb[31].mxu0 }
 0x1ab   : > { %1246 = vxpose.xlu0.b32.end [2/2] (short) (narrow) %v2643_v44, 8  ;;  %1277 = vxpose.xlu1.b32.start [1/2] (short) (narrow) %v748_v47, 8 }
 0x1ad   : > { %v2649_v48 = vpop.f32.mrb[32].mxu0 }
 0x1ae   : > { %v758_v49 = vpop.f32.mrb[33].mxu0 }
 0x1af   : > { %1278 = vxpose.xlu1.b32.end [2/2] (short) (narrow) %v2646_v46, 8  ;;  %1309 = vxpose.xlu0.b32.start [1/2] (short) (narrow) %v758_v49, 8 }
 0x1b1   : > { %v2652_v50 = vpop.f32.mrb[34].mxu0 }
 0x1b2   : > { %v768_v51 = vpop.f32.mrb[35].mxu0 }
 0x1b3   : > { %1310 = vxpose.xlu0.b32.end [2/2] (short) (narrow) %v2649_v48, 8  ;;  %1341 = vxpose.xlu1.b32.start [1/2] (short) (narrow) %v768_v51, 8 }
 0x1b7   : > { %1373 = vxpose.xlu0.b32.start [1/2] (short) (narrow) %v3497_v63, 8  ;;  %1342 = vxpose.xlu1.b32.end [2/2] (short) (narrow) %v2652_v50, 8 }
 0x1bb   : > { %1374 = vxpose.xlu0.b32.end [2/2] (short) (narrow) %v3495_v61, 8  ;;  %1405 = vxpose.xlu1.b32.start [1/2] (short) (narrow) %v3501_v3, 8 }
 0x1bf   : > { %1406 = vxpose.xlu1.b32.end [2/2] (short) (narrow) %v3499_v1, 8 }
 0x1ef   : > { %v813_v58 = vpop.trf.xlu0 }
 0x1f0   : > { %v1457_v59 = vcombine.high %v813_v58, %v813_v58  ;;  %v1464_v60 = vrot.slane %v813_v58, %v3509_v57 }
 0x1f2   : > { %v1471_v62 = vrot.slane %v1457_v59, %v3509_v57  ;;  %v1472_v63 = vcombine.high %v1464_v60, %v1464_v60 }
 0x1f3   : > { %v845_v0 = vpop.trf.xlu1 }
 0x1f4   : > { %v1777_v61 = vcombine.low %v1464_v60, %v1472_v63  ;;  %v1473_v2 = vcombine.high %v845_v0, %v845_v0  ;;  %v1480_v3 = vrot.slane %v845_v0, %v3509_v57 }
 0x1f6   : > { %v1785_v1 = vrot.slane %v1777_v61, %v3509_v57  ;;  %v1487_v4 = vrot.slane %v1473_v2, %v3509_v57  ;;  %v1488_v5 = vcombine.high %v1480_v3, %v1480_v3  ;;  %v1778_v8 = vcombine.low %v1471_v62, %v1480_v3 }
 0x1f7   : > { %v877_v9 = vpop.trf.xlu0 }
 0x1f8   : > { %v1792_v10 = vrot.slane %v1778_v8, %v3509_v57  ;;  %v1489_v11 = vcombine.high %v877_v9, %v877_v9  ;;  %v1496_v12 = vrot.slane %v877_v9, %v3509_v57  ;;  %v1794_v20 = vcombine.low %v1488_v5, %v1487_v4 }
 0x1fa   : > { %v1793_v21 = vcombine.low %v1785_v1, %v1792_v10  ;;  %v1503_v23 = vrot.slane %v1489_v11, %v3509_v57  ;;  %v1504_v24 = vcombine.high %v1496_v12, %v1496_v12  ;;  %v1802_v32 = vrot.slane %v1794_v20, %v3509_v57 }
 0x1fb   : > { %v909_v25 = vpop.trf.xlu1 }
 0x1fc   : > { %v1795_v26 = vcombine.low %v1496_v12, %v1504_v24  ;;  %v1505_v27 = vcombine.high %v909_v25, %v909_v25  ;;  %v1512_v31 = vrot.slane %v909_v25, %v3509_v57  ;;  %2664 = vmatmul.mubr.msk.f32.vlgmr.msra.gmra.mrb[4].mxu1 %vm359_vm0, %v1793_v21 }
 0x1fd   : > { %2666 = vmatprep.mubr.msk.f32.mxu1 %vm3045_vm1, %v3046_v16 }
 0x1fe   : > { %v1809_v33 = vrot.slane %v1795_v26, %v3509_v57  ;;  %v1519_v36 = vrot.slane %v1505_v27, %v3509_v57  ;;  %v1520_v37 = vcombine.high %v1512_v31, %v1512_v31  ;;  %v1811_v38 = vcombine.low %v1503_v23, %v1512_v31 }
 0x1ff   : > { %v941_v39 = vpop.trf.xlu0 }
 0x200   : > { %v1812_v40 = vcombine.low %v1520_v37, %v1519_v36  ;;  %v1819_v41 = vrot.slane %v1811_v38, %v3509_v57  ;;  %v1521_v42 = vcombine.high %v941_v39, %v941_v39  ;;  %v1528_v43 = vrot.slane %v941_v39, %v3509_v57 }
 0x201   : > { %v1810_v44 = vcombine.low %v1802_v32, %v1809_v33 }
 0x202   : > { %v1826_v45 = vrot.slane %v1812_v40, %v3509_v57  ;;  %v1535_v46 = vrot.slane %v1521_v42, %v3509_v57  ;;  %v1536_v47 = vcombine.high %v1528_v43, %v1528_v43 }
 0x203   : > { %v973_v48 = vpop.trf.xlu1  ;;  %2667 = vmatmul.mubr.msk.f32.gmra.mrb[6].mxu1 %vm359_vm0, %v1810_v44 }
 0x204   : > { %v1828_v49 = vcombine.low %v1528_v43, %v1536_v47  ;;  %v1537_v50 = vcombine.high %v973_v48, %v973_v48  ;;  %v1544_v51 = vrot.slane %v973_v48, %v3509_v57  ;;  %2669 = vmatprep.mubr.msk.f32.mxu1 %vm3045_vm1, %v3046_v16  ;;  %v1827_v52 = vcombine.low %v1819_v41, %v1826_v45 }
 0x206   : > { %v1836_v53 = vrot.slane %v1828_v49, %v3509_v57  ;;  %v1551_v54 = vrot.slane %v1537_v50, %v3509_v57  ;;  %v1552_v55 = vcombine.high %v1544_v51, %v1544_v51  ;;  %v1829_v56 = vcombine.low %v1535_v46, %v1544_v51 }
 0x207   : > { %v1005_v58 = vpop.trf.xlu0  ;;  %2670 = vmatmul.mubr.msk.f32.gmra.mrb[8].mxu1 %vm359_vm0, %v1827_v52 }
 0x208   : > { %v1843_v59 = vrot.slane %v1829_v56, %v3509_v57  ;;  %v1553_v60 = vcombine.high %v1005_v58, %v1005_v58  ;;  %v1560_v62 = vrot.slane %v1005_v58, %v3509_v57  ;;  %2672 = vmatprep.mubr.msk.f32.mxu1 %vm3045_vm1, %v3046_v16  ;;  %v1845_v63 = vcombine.low %v1552_v55, %v1551_v54 }
 0x20a   : > { %v1567_v0 = vrot.slane %v1553_v60, %v3509_v57  ;;  %v1568_v61 = vcombine.high %v1560_v62, %v1560_v62  ;;  %v1844_v2 = vcombine.low %v1836_v53, %v1843_v59  ;;  %v1853_v8 = vrot.slane %v1845_v63, %v3509_v57 }
 0x20b   : > { %v1037_v3 = vpop.trf.xlu1 }
 0x20c   : > { %v1846_v1 = vcombine.low %v1560_v62, %v1568_v61  ;;  %v1569_v4 = vcombine.high %v1037_v3, %v1037_v3  ;;  %v1576_v5 = vrot.slane %v1037_v3, %v3509_v57  ;;  %2673 = vmatmul.mubr.msk.f32.gmra.mrb[10].mxu1 %vm359_vm0, %v1844_v2 }
 0x20d   : > { %2675 = vmatprep.mubr.msk.f32.mxu1 %vm3045_vm1, %v3046_v16 }
 0x20e   : > { %v1860_v9 = vrot.slane %v1846_v1, %v3509_v57  ;;  %v1583_v10 = vrot.slane %v1569_v4, %v3509_v57  ;;  %v1584_v11 = vcombine.high %v1576_v5, %v1576_v5  ;;  %v1862_v12 = vcombine.low %v1567_v0, %v1576_v5 }
 0x20f   : > { %v1069_v20 = vpop.trf.xlu0 }
 0x210   : > { %v1863_v21 = vcombine.low %v1584_v11, %v1583_v10  ;;  %v1870_v23 = vrot.slane %v1862_v12, %v3509_v57  ;;  %v1585_v24 = vcombine.high %v1069_v20, %v1069_v20  ;;  %v1592_v25 = vrot.slane %v1069_v20, %v3509_v57 }
 0x211   : > { %v1861_v26 = vcombine.low %v1853_v8, %v1860_v9 }
 0x212   : > { %v1877_v27 = vrot.slane %v1863_v21, %v3509_v57  ;;  %v1599_v31 = vrot.slane %v1585_v24, %v3509_v57  ;;  %v1600_v32 = vcombine.high %v1592_v25, %v1592_v25 }
 0x213   : > { %2676 = vmatmul.mubr.msk.f32.gmra.mrb[12].mxu1 %vm359_vm0, %v1861_v26  ;;  %v1101_v33 = vpop.trf.xlu1 }
 0x214   : > { %v1879_v36 = vcombine.low %v1592_v25, %v1600_v32  ;;  %v1601_v37 = vcombine.high %v1101_v33, %v1101_v33  ;;  %v1608_v38 = vrot.slane %v1101_v33, %v3509_v57  ;;  %2678 = vmatprep.mubr.msk.f32.mxu1 %vm3045_vm1, %v3046_v16  ;;  %v1878_v39 = vcombine.low %v1870_v23, %v1877_v27 }
 0x216   : > { %v1887_v40 = vrot.slane %v1879_v36, %v3509_v57  ;;  %v1615_v41 = vrot.slane %v1601_v37, %v3509_v57  ;;  %v1616_v42 = vcombine.high %v1608_v38, %v1608_v38  ;;  %v1880_v43 = vcombine.low %v1599_v31, %v1608_v38 }
 0x217   : > { %2679 = vmatmul.mubr.msk.f32.gmra.mrb[14].mxu1 %vm359_vm0, %v1878_v39  ;;  %v1133_v44 = vpop.trf.xlu0 }
 0x218   : > { %v1894_v45 = vrot.slane %v1880_v43, %v3509_v57  ;;  %v1617_v46 = vcombine.high %v1133_v44, %v1133_v44  ;;  %v1624_v47 = vrot.slane %v1133_v44, %v3509_v57  ;;  %2681 = vmatprep.mubr.msk.f32.mxu1 %vm3045_vm1, %v3046_v16  ;;  %v1896_v48 = vcombine.low %v1616_v42, %v1615_v41 }
 0x21a   : > { %v1631_v49 = vrot.slane %v1617_v46, %v3509_v57  ;;  %v1632_v50 = vcombine.high %v1624_v47, %v1624_v47  ;;  %v1895_v51 = vcombine.low %v1887_v40, %v1894_v45  ;;  %v1904_v56 = vrot.slane %v1896_v48, %v3509_v57 }
 0x21b   : > { %v1165_v52 = vpop.trf.xlu1 }
 0x21c   : > { %v1897_v53 = vcombine.low %v1624_v47, %v1632_v50  ;;  %v1633_v54 = vcombine.high %v1165_v52, %v1165_v52  ;;  %v1640_v55 = vrot.slane %v1165_v52, %v3509_v57  ;;  %2682 = vmatmul.mubr.msk.f32.gmra.mrb[16].mxu1 %vm359_vm0, %v1895_v51 }
 0x21d   : > { %2684 = vmatprep.mubr.msk.f32.mxu1 %vm3045_vm1, %v3046_v16 }
 0x21e   : > { %v1911_v58 = vrot.slane %v1897_v53, %v3509_v57  ;;  %v1647_v59 = vrot.slane %v1633_v54, %v3509_v57  ;;  %v1648_v60 = vcombine.high %v1640_v55, %v1640_v55  ;;  %v1913_v62 = vcombine.low %v1631_v49, %v1640_v55 }
 0x21f   : > { %v1197_v63 = vpop.trf.xlu0 }
 0x220   : > { %v1914_v0 = vcombine.low %v1648_v60, %v1647_v59  ;;  %v1921_v61 = vrot.slane %v1913_v62, %v3509_v57  ;;  %v1649_v2 = vcombine.high %v1197_v63, %v1197_v63  ;;  %v1656_v3 = vrot.slane %v1197_v63, %v3509_v57 }
 0x221   : > { %v1912_v1 = vcombine.low %v1904_v56, %v1911_v58 }
 0x222   : > { %v1928_v4 = vrot.slane %v1914_v0, %v3509_v57  ;;  %v1663_v5 = vrot.slane %v1649_v2, %v3509_v57  ;;  %v1664_v8 = vcombine.high %v1656_v3, %v1656_v3 }
 0x223   : > { %2685 = vmatmul.mubr.msk.f32.gmra.mrb[18].mxu1 %vm359_vm0, %v1912_v1  ;;  %v1229_v9 = vpop.trf.xlu1 }
 0x224   : > { %v1930_v10 = vcombine.low %v1656_v3, %v1664_v8  ;;  %v1665_v11 = vcombine.high %v1229_v9, %v1229_v9  ;;  %v1672_v12 = vrot.slane %v1229_v9, %v3509_v57  ;;  %2687 = vmatprep.mubr.msk.f32.mxu1 %vm3045_vm1, %v3046_v16  ;;  %v1929_v20 = vcombine.low %v1921_v61, %v1928_v4 }
 0x226   : > { %v1938_v21 = vrot.slane %v1930_v10, %v3509_v57  ;;  %v1679_v23 = vrot.slane %v1665_v11, %v3509_v57  ;;  %v1680_v24 = vcombine.high %v1672_v12, %v1672_v12  ;;  %v1931_v25 = vcombine.low %v1663_v5, %v1672_v12 }
 0x227   : > { %2688 = vmatmul.mubr.msk.f32.gmra.mrb[20].mxu1 %vm359_vm0, %v1929_v20  ;;  %v1261_v26 = vpop.trf.xlu0 }
 0x228   : > { %v1945_v27 = vrot.slane %v1931_v25, %v3509_v57  ;;  %v1681_v31 = vcombine.high %v1261_v26, %v1261_v26  ;;  %v1688_v32 = vrot.slane %v1261_v26, %v3509_v57  ;;  %2690 = vmatprep.mubr.msk.f32.mxu1 %vm3045_vm1, %v3046_v16  ;;  %v1947_v33 = vcombine.low %v1680_v24, %v1679_v23 }
 0x22a   : > { %v1695_v36 = vrot.slane %v1681_v31, %v3509_v57  ;;  %v1696_v37 = vcombine.high %v1688_v32, %v1688_v32  ;;  %v1946_v38 = vcombine.low %v1938_v21, %v1945_v27  ;;  %v1955_v43 = vrot.slane %v1947_v33, %v3509_v57 }
 0x22b   : > { %v1293_v39 = vpop.trf.xlu1 }
 0x22c   : > { %v1948_v40 = vcombine.low %v1688_v32, %v1696_v37  ;;  %v1697_v41 = vcombine.high %v1293_v39, %v1293_v39  ;;  %v1704_v42 = vrot.slane %v1293_v39, %v3509_v57  ;;  %2691 = vmatmul.mubr.msk.f32.gmra.mrb[22].mxu1 %vm359_vm0, %v1946_v38 }
 0x22d   : > { %2693 = vmatprep.mubr.msk.f32.mxu1 %vm3045_vm1, %v3046_v16 }
 0x22e   : > { %v1962_v44 = vrot.slane %v1948_v40, %v3509_v57  ;;  %v1711_v45 = vrot.slane %v1697_v41, %v3509_v57  ;;  %v1712_v46 = vcombine.high %v1704_v42, %v1704_v42  ;;  %v1964_v47 = vcombine.low %v1695_v36, %v1704_v42 }
 0x22f   : > { %v1325_v48 = vpop.trf.xlu0  ;;  %v354_v40 = vand.u32 2147483647, %v346_v17  ;;  %v355_v42 = vand.u32 2147483647, %v347_v18 }
 0x230   : > { %v1965_v49 = vcombine.low %v1712_v46, %v1711_v45  ;;  %v1972_v50 = vrot.slane %v1964_v47, %v3509_v57  ;;  %v1713_v51 = vcombine.high %v1325_v48, %v1325_v48  ;;  %v1720_v52 = vrot.slane %v1325_v48, %v3509_v57 }
 0x231   : > { %v1963_v53 = vcombine.low %v1955_v43, %v1962_v44  ;;  %v365_v41 = vsel %vm359_vm0, %v354_v40, 0.0  ;;  %v367_v44 = vsel %vm359_vm0, %v355_v42, 0.0 }
 0x232   : > { %v1979_v54 = vrot.slane %v1965_v49, %v3509_v57  ;;  %v1727_v55 = vrot.slane %v1713_v51, %v3509_v57  ;;  %v1728_v56 = vcombine.high %v1720_v52, %v1720_v52  ;;  %v366_v43 = vadd.f32 %v365_v41, %v3388_v29 }
 0x233   : > { %2694 = vmatmul.mubr.msk.f32.gmra.mrb[24].mxu1 %vm359_vm0, %v1963_v53  ;;  %v1357_v58 = vpop.trf.xlu1 }
 0x234   : > { %v1981_v59 = vcombine.low %v1720_v52, %v1728_v56  ;;  %v1729_v60 = vcombine.high %v1357_v58, %v1357_v58  ;;  %v1736_v62 = vrot.slane %v1357_v58, %v3509_v57  ;;  %2696 = vmatprep.mubr.msk.f32.mxu1 %vm3045_vm1, %v3046_v16  ;;  %v1980_v63 = vcombine.low %v1972_v50, %v1979_v54 }
 0x235   : > { %v368_v45 = vadd.f32 %v367_v44, %v366_v43 }
 0x236   : > { %v1989_v0 = vrot.slane %v1981_v59, %v3509_v57  ;;  %v1743_v61 = vrot.slane %v1729_v60, %v3509_v57  ;;  %v1744_v2 = vcombine.high %v1736_v62, %v1736_v62  ;;  %v1982_v3 = vcombine.low %v1727_v55, %v1736_v62 }
 0x237   : > { %2697 = vmatmul.mubr.msk.f32.gmra.mrb[26].mxu1 %vm359_vm0, %v1980_v63  ;;  %v1389_v1 = vpop.trf.xlu0 }
 0x238   : > { %v1996_v4 = vrot.slane %v1982_v3, %v3509_v57  ;;  %v1745_v5 = vcombine.high %v1389_v1, %v1389_v1  ;;  %v1752_v8 = vrot.slane %v1389_v1, %v3509_v57  ;;  %2699 = vmatprep.mubr.msk.f32.mxu1 %vm3045_vm1, %v3046_v16  ;;  %v1998_v9 = vcombine.low %v1744_v2, %v1743_v61 }
 0x23a   : > { %v1760_v10 = vcombine.high %v1752_v8, %v1752_v8  ;;  %v1997_v11 = vcombine.low %v1989_v0, %v1996_v4  ;;  %v1759_v20 = vrot.slane %v1745_v5, %v3509_v57  ;;  %v2006_v25 = vrot.slane %v1998_v9, %v3509_v57 }
 0x23b   : > { %v1421_v12 = vpop.trf.xlu1 }
 0x23c   : > { %v1999_v21 = vcombine.low %v1752_v8, %v1760_v10  ;;  %v1761_v23 = vcombine.high %v1421_v12, %v1421_v12  ;;  %v1768_v24 = vrot.slane %v1421_v12, %v3509_v57  ;;  %2700 = vmatmul.mubr.msk.f32.gmra.mrb[28].mxu1 %vm359_vm0, %v1997_v11 }
 0x23d   : > { %2702 = vmatprep.mubr.msk.f32.mxu1 %vm3045_vm1, %v3046_v16 }
 0x23e   : > { %v2013_v26 = vrot.slane %v1999_v21, %v3509_v57  ;;  %v1775_v27 = vrot.slane %v1761_v23, %v3509_v57  ;;  %v1776_v31 = vcombine.high %v1768_v24, %v1768_v24  ;;  %v2015_v32 = vcombine.low %v1759_v20, %v1768_v24 }
 0x240   : > { %v2016_v33 = vcombine.low %v1776_v31, %v1775_v27  ;;  %v2014_v36 = vcombine.low %v2006_v25, %v2013_v26  ;;  %v2023_v37 = vrot.slane %v2015_v32, %v3509_v57 }
 0x242   : > { %v2030_v38 = vrot.slane %v2016_v33, %v3509_v57  ;;  %2703 = vmatmul.mubr.msk.f32.gmra.mrb[30].mxu1 %vm359_vm0, %v2014_v36  ;;  %v356_v57 = vand.u32 2147483647, %v348_v22 }
 0x243   : > { %2705 = vmatprep.mubr.msk.f32.mxu1 %vm3045_vm1, %v3046_v16  ;;  %v349_v16 = vsub.f32 %v3386_v28, %v3391_v30 }
 0x244   : > { %v2031_v39 = vcombine.low %v2023_v37, %v2030_v38  ;;  %v369_v17 = vsel %vm359_vm0, %v356_v57, 0.0 }
 0x245   : > { %v357_v13 = vand.u32 2147483647, %v349_v16  ;;  %v370_v7 = vadd.f32 %v369_v17, %v368_v45 }
 0x246   : > { %2706 = vmatmul.mubr.msk.f32.gmra.mrb[32].mxu1 %vm359_vm0, %v2031_v39 }
 0x247   : > { %v371_v18 = vsel %vm359_vm0, %v357_v13, 0.0 }
 0x248   : > { %v372_v15 = vadd.f32 %v371_v18, %v370_v7 }
 0x24a   : > { %v374_v22 = vadd.f32 %v373_v19, %v372_v15 }
 0x24c   : > { %375 = vadd.xlane.f32.xlu0 %v374_v22 }
 0x2cf   : > { %v2128_v29 = vpop.f32.mrb[4].mxu1 }
 0x2d0   : > { %v2665_v28 = vpop.f32.mrb[5].mxu1  ;;  %v2202_v49 = vmul.f32 %v2128_v29, %v2128_v29 }
 0x2d6   : > { %v2133_v30 = vpop.f32.mrb[6].mxu1 }
 0x2d7   : > { %v2668_v46 = vpop.f32.mrb[7].mxu1  ;;  %v2203_v54 = vmul.f32 %v2133_v30, %v2133_v30 }
 0x2da   : > { %v2138_v47 = vpop.f32.mrb[8].mxu1 }
 0x2db   : > { %v2671_v48 = vpop.f32.mrb[9].mxu1  ;;  %v2204_v62 = vmul.f32 %v2138_v47, %v2138_v47 }
 0x2df   : > { %v2143_v34 = vpop.f32.mrb[10].mxu1 }
 0x2e0   : > { %v2205_v35 = vmul.f32 %v2143_v34, %v2143_v34  ;;  %v2208_v50 = vmul.f32 %v2143_v34, %v2128_v29  ;;  %v2674_v51 = vpop.f32.mrb[11].mxu1 }
 0x2e2   : > { %v2235_v52 = vadd.f32 %v2205_v35, %v2202_v49  ;;  %v2220_v45 = vmul.f32 2.0, %v2208_v50 }
 0x2e4   : > { %v2238_v25 = vadd.f32 0.0001, %v2235_v52  ;;  %v2223_v14 = vadd.f32 0.0001, %v2220_v45 }
 0x2e6   : > { %v2148_v53 = vpop.f32.mrb[12].mxu1 }
 0x2e7   : > { %v2206_v55 = vmul.f32 %v2148_v53, %v2148_v53  ;;  %v2209_v56 = vmul.f32 %v2148_v53, %v2133_v30  ;;  %v2677_v58 = vpop.f32.mrb[13].mxu1 }
 0x2e9   : > { %v2236_v59 = vadd.f32 %v2206_v55, %v2203_v54  ;;  %v2221_v19 = vmul.f32 2.0, %v2209_v56 }
 0x2ea   : > { %v2153_v60 = vpop.f32.mrb[14].mxu1 }
 0x2eb   : > { %v2207_v63 = vmul.f32 %v2153_v60, %v2153_v60  ;;  %v2210_v0 = vmul.f32 %v2153_v60, %v2138_v47  ;;  %v2680_v61 = vpop.f32.mrb[15].mxu1  ;;  %v2239_v38 = vadd.f32 0.0001, %v2236_v59 }
 0x2ed   : > { %v2237_v2 = vadd.f32 %v2207_v63, %v2204_v62  ;;  %v2222_v34 = vmul.f32 2.0, %v2210_v0 }
 0x2ef   : > { %v2158_v3 = vpop.f32.mrb[16].mxu1  ;;  %v2240_v43 = vadd.f32 0.0001, %v2237_v2 }
 0x2f0   : > { %v2211_v1 = vsub.f32 %v2158_v3, %v2202_v49  ;;  %v2683_v4 = vpop.f32.mrb[17].mxu1  ;;  %v2224_v49 = vadd.f32 0.0001, %v2221_v19 }
 0x2f6   : > { %v2163_v5 = vpop.f32.mrb[18].mxu1 }
 0x2f7   : > { %v2212_v8 = vsub.f32 %v2163_v5, %v2203_v54  ;;  %v2686_v9 = vpop.f32.mrb[19].mxu1 }
 0x2fa   : > { %v2168_v10 = vpop.f32.mrb[20].mxu1 }
 0x2fb   : > { %v2213_v11 = vsub.f32 %v2168_v10, %v2204_v62  ;;  %v2689_v12 = vpop.f32.mrb[21].mxu1 }
 0x2ff   : > { %v2173_v20 = vpop.f32.mrb[22].mxu1 }
 0x300   : > { %v2214_v21 = vsub.f32 %v2173_v20, %v2205_v35  ;;  %v2692_v23 = vpop.f32.mrb[23].mxu1 }
 0x302   : > { %v2241_v24 = vadd.f32 %v2214_v21, %v2211_v1 }
 0x304   : > { %v2244_v26 = vadd.f32 0.0009, %v2241_v24 }
 0x306   : > { %v2247_v27 = vmul.f32 %v2244_v26, %v2238_v25  ;;  %v2178_v31 = vpop.f32.mrb[24].mxu1 }
 0x307   : > { %v2215_v32 = vsub.f32 %v2178_v31, %v2206_v55  ;;  %v2695_v33 = vpop.f32.mrb[25].mxu1  ;;  %v2225_v55 = vadd.f32 0.0001, %v2222_v34 }
 0x308   : > { %2804 = vrcp.f32 %v2247_v27 }
 0x309   : > { %v2242_v36 = vadd.f32 %v2215_v32, %v2212_v8 }
 0x30a   : > { %v2183_v37 = vpop.f32.mrb[26].mxu1 }
 0x30b   : > { %v2245_v39 = vadd.f32 0.0009, %v2242_v36  ;;  %v2216_v40 = vsub.f32 %v2183_v37, %v2207_v63  ;;  %v2698_v41 = vpop.f32.mrb[27].mxu1 }
 0x30d   : > { %v2248_v42 = vmul.f32 %v2245_v39, %v2239_v38  ;;  %v2243_v57 = vadd.f32 %v2216_v40, %v2213_v11 }
 0x30f   : > { %v2246_v16 = vadd.f32 0.0009, %v2243_v57  ;;  %v2188_v44 = vpop.f32.mrb[28].mxu1  ;;  %2806 = vrcp.f32 %v2248_v42 }
 0x310   : > { %v2217_v6 = vsub.f32 %v2188_v44, %v2208_v50  ;;  %v2701_v13 = vpop.f32.mrb[29].mxu1 }
 0x311   : > { %v2249_v17 = vmul.f32 %v2246_v16, %v2240_v43 }
 0x312   : > { %v2226_v7 = vmul.f32 2.0, %v2217_v6  ;;  %v2805_v30 = vpop.eup %2804 }
 0x313   : > { %2808 = vrcp.f32 %v2249_v17 }
 0x314   : > { %v2229_v18 = vadd.f32 0.0009, %v2226_v7 }
 0x315   : > { %v2193_v15 = vpop.f32.mrb[30].mxu1 }
 0x316   : > { %v2232_v22 = vmul.f32 %v2229_v18, %v2223_v14  ;;  %v2218_v29 = vsub.f32 %v2193_v15, %v2209_v56  ;;  %v2704_v28 = vpop.f32.mrb[31].mxu1 }
 0x318   : > { %v2251_v46 = vmul.f32 %v2805_v30, %v2232_v22  ;;  %v2227_v47 = vmul.f32 2.0, %v2218_v29 }
 0x319   : > { %v2198_v48 = vpop.f32.mrb[32].mxu1  ;;  %v2807_v54 = vpop.eup %2806 }
 0x31a   : > { %v2230_v35 = vadd.f32 0.0009, %v2227_v47  ;;  %v2219_v50 = vsub.f32 %v2198_v48, %v2210_v0  ;;  %v2707_v51 = vpop.f32.mrb[33].mxu1  ;;  %v2257_v56 = vsel %vm2256_vm2, %v2251_v46, 0.0  ;;  %v376_v0 = vpop.xlane.xlu0 %375 }
 0x31b   : > { %v377_v4 = vrot.slane %v376_v0, 4 }
 0x31c   : > { %v2233_v52 = vmul.f32 %v2230_v35, %v2224_v49  ;;  %v2228_v53 = vmul.f32 2.0, %v2219_v50 }
 0x31d   : > { %v2809_v63 = vpop.eup %2808  ;;  %v378_v5 = vadd.f32 %v377_v4, %v376_v0 }
 0x31e   : > { %v2253_v58 = vmul.f32 %v2807_v54, %v2233_v52  ;;  %v2231_v59 = vadd.f32 0.0009, %v2228_v53 }
 0x31f   : > { %v379_v8 = vrot.slane %v378_v5, 2 }
 0x320   : > { %v2234_v60 = vmul.f32 %v2231_v59, %v2225_v55  ;;  %v2258_v62 = vsel %vm2256_vm2, %v2253_v58, 0.0 }
 0x321   : > { %v2259_v61 = vadd.f32 %v2258_v62, %v2257_v56  ;;  %v380_v9 = vadd.f32 %v379_v8, %v378_v5 }
 0x322   : > { %v2255_v2 = vmul.f32 %v2809_v63, %v2234_v60 }
 0x323   : > { %v381_v10 = vrot.slane %v380_v9, 1 }
 0x324   : > { %v2260_v3 = vsel %vm2256_vm2, %v2255_v2, 0.0 }
 0x325   : > { %v2261_v1 = vadd.f32 %v2260_v3, %v2259_v61  ;;  %v382_v11 = vadd.f32 %v381_v10, %v380_v9 }
 0x327   : > { %2262 = vadd.xlane.f32.xlu1 %v2261_v1  ;;  %2717 = vpush %v382_v11 }
 0x358   : > { %s2718_s9 = spop %2717 }
 0x359   : > { %v2273_v12 = vstv %s2718_s9 }
 0x35a   : > { %2274 = vst [vmem:[%s324_s8] sm:$0xff] %v2273_v12 }
 0x35b   : > { %2939 = shalt.err (!%p2936_p7)
}
 0x35c   : > { %s2940_s2 = scalar_lea.hbm %s3652_s7, 128  ;;  %s2944_s17 = scalar_lea.hbm %s3728_s5, 256 }
 0x35d   : > { %p2941_p9 = scmp.ne.s32.totalorder %s3652_s7, %s2940_s2  ;;  %p2945_p11 = scmp.lt.u32.totalorder %s3652_s7, %s3728_s5 }
 0x35e   : > { %p2946_p2 = scmp.lt.u32.totalorder %s2944_s17, %s2940_s2  ;;  %p2948_p1 = scmp.lt.u32.totalorder %s2940_s2, %s3652_s7 }
 0x35f   : > { %p2942_p0 = pnand %p2941_p9, %p3754_p13 }
 0x360   : > { %p2947_p12 = por %p2946_p2, %p2945_p11 }
 0x361   : > { %p2943_p8 = pneg %p2942_p0 }
 0x362   : > { %p2949_p6 = por %p2948_p1, %p2947_p12 }
 0x364   : > { %p2950_p10 = pnand %p2949_p6, %p2943_p8 }
 0x366   : > { %2953 = shalt.err (!%p2950_p10)
}
 0x367   : > { %2734 = dma.vmem_to_hbm [thread:$0]  (%p3754_p13), %s2308_s15, 128, %s3652_s7, %s2281_s10  }
 0x368   : > { %s317_s14 = scalar_lea.vmem [#allocation10], %s2469_s24  ;;  %s3681_s10 = scalar_lea.hbm %s3727_s4, %s2528_s11 }
 0x369   : > { %s2294_s16 = sshll.u32 %s317_s14, 4  ;;  %s2276_s0 = scalar_lea.sflag [#allocation4], %s3301_s13  ;;  %s3674_s16 = int_to_ptr.vmem [resolvable:$true] %s2294_s16 }
 0x36a   : > { %s2954_s6 = scalar_lea.vmem %s3674_s16, 128  ;;  %s3049_s24 = smov [#allocation10]  }
 0x36b   : > { %p2955_p4 = scmp.ne.s32.totalorder %s3674_s16, %s2954_s6  ;;  %s2958_s30 = sshll.u32 %s3049_s24, 4  ;;  %s2959_s30 = int_to_ptr.vmem [resolvable:$false] %s2958_s30 }
 0x36c   : > { %s2960_s2 = scalar_lea.vmem %s2959_s30, 256  ;;  %p2961_p7 = scmp.lt.s32.totalorder %s3674_s16, %s2959_s30 }
 0x36d   : > { %p2956_p5 = pnand %p2955_p4, %p3754_p13  ;;  %p2962_p9 = scmp.lt.s32.totalorder %s2960_s2, %s2954_s6 }
 0x36f   : > { %p2957_p3 = pneg %p2956_p5  ;;  %p2963_p0 = por %p2962_p9, %p2961_p7 }
 0x371   : > { %p2964_p8 = pnand %p2963_p0, %p2957_p3 }
 0x3b4   : > { %v2263_v20 = vpop.xlane.xlu1 %2262 }
 0x3b5   : > { %v2264_v21 = vrot.slane %v2263_v20, 4 }
 0x3b7   : > { %v2265_v23 = vadd.f32 %v2264_v21, %v2263_v20 }
 0x3b9   : > { %v2266_v24 = vrot.slane %v2265_v23, 2 }
 0x3bb   : > { %v2267_v25 = vadd.f32 %v2266_v24, %v2265_v23 }
 0x3bd   : > { %v2268_v26 = vrot.slane %v2267_v25, 1 }
 0x3bf   : > { %v2269_v27 = vadd.f32 %v2268_v26, %v2267_v25 }
 0x3c1   : > { %2719 = vpush %v2269_v27 }
 0x3f2   : > { %s2720_s28 = spop %2719 }
 0x3f3   : > { %v2271_v31 = vstv %s2720_s28 }
 0x3f4   : > { %2272 = vst [vmem:[%s317_s14] sm:$0xff] %v2271_v31 }
 0x3f5   : > { %2967 = shalt.err (!%p2964_p8)
}
 0x3f6   : > { %s2968_s22 = scalar_lea.hbm %s3681_s10, 128  ;;  %s2972_s12 = scalar_lea.hbm %s3727_s4, 256 }
 0x3f7   : > { %p2969_p11 = scmp.ne.s32.totalorder %s3681_s10, %s2968_s22  ;;  %p2973_p1 = scmp.lt.u32.totalorder %s3681_s10, %s3727_s4 }
 0x3f8   : > { %p2974_p6 = scmp.lt.u32.totalorder %s2972_s12, %s2968_s22  ;;  %p2976_p4 = scmp.lt.u32.totalorder %s2968_s22, %s3681_s10 }
 0x3f9   : > { %p2970_p2 = pnand %p2969_p11, %p3754_p13 }
 0x3fa   : > { %p2975_p10 = por %p2974_p6, %p2973_p1 }
 0x3fb   : > { %p2971_p12 = pneg %p2970_p2 }
 0x3fc   : > { %p2977_p5 = por %p2976_p4, %p2975_p10 }
 0x3fe   : > { %p2978_p3 = pnand %p2977_p5, %p2971_p12 }
 0x400   : > { %2981 = shalt.err (!%p2978_p3)
}
 0x401   : > { %2733 = dma.vmem_to_hbm [thread:$0]  (%p3754_p13), %s3674_s16, 128, %s3681_s10, %s2276_s0  }
 0x402 PF: > { %s2319_s9 = sand.u32 1, %s3024_s18   ;;  %p3755_p7 = scmp.ne.s32.totalorder %s3739_s25, 0 }
 0x403   : > { %p3756_p9 = scmp.ge.s32.totalorder %s3036_s21, 2  ;;  %s2320_s8 = scalar_lea.sflag [#allocation4], %s2319_s9 }
 0x405   : > { %p2752_p0 = pnand %p3756_p9, %p3755_p7 }
 0x407   : > { %3015 = dma.done.wait (!%p2752_p0), %s2320_s8, 128  }
 0x408   : > { %3017 = vsyncadd (!%p2752_p0), %s2320_s8, 4294967168  ;;  %s2329_s14 = scalar_lea.sflag [#allocation12], %s2319_s9 }
 0x409   : > { %3019 = dma.done.wait (!%p2752_p0), %s2329_s14, 128  }
 0x40a   : > { %3021 = vsyncadd (!%p2752_p0), %s2329_s14, 4294967168  ;;  %p26_p13 = scmp.ge.s32.totalorder %s3196_s29, 4   ;;  %s3757_s18 = smov %s3028_s19 }
 0x40b   : > { %s3758_s19 = smov %s3032_s20  ;;  %s3759_s20 = smov %s3212_s27 }
 0x40c   : > { %s3760_s21 = smov %s3196_s29  ;;  %28 = sbr.rel (!%p26_p13) target bundleno = 13 (0xd), region = 119 }
 0x413   :  { %2334 = vsyncpa [#allocation3], 1 }
 0x414   :  { %2336 = vsyncpa [#allocation3 + $0x1], 1 }
 0x415   :  { %2337 = vsyncpa [#allocation6], 1 }
 0x416   :  { %2339 = vsyncpa [#allocation6 + $0x1], 1 }
 0x417   :  { %2340 = vsyncpa [#allocation9], 1 }
 0x418   :  { %2341 = vsyncpa [#allocation4], 1 }
 0x419   :  { %2343 = vsyncpa [#allocation4 + $0x1], 1 }
 0x41a   :  { %2344 = vsyncpa [#allocation12], 1 }
 0x41b   :  { %2346 = vsyncpa [#allocation12 + $0x1], 1 }

</bundles_post_ra>
